<compile_context>
chip_gen: v7x
topology: tpu7x:2x2x1
jax: 0.10.0
libtpu: 0.0.40
codegen_flags: <defaults>
</compile_context>

<pallas_src>
import functools

import jax
import jax.numpy as jnp
from jax.experimental import pallas as pl
from jax.experimental.pallas import tpu as pltpu


def _round_up(x, m):
    return ((x + m - 1) // m) * m


def _pad_to(a, shape):
    pads = [(0, t - s) for s, t in zip(a.shape, shape)]
    return jnp.pad(a, pads)


def _reward_kernel(n_hidden, mm_dtype, *refs):
    """Fused concat-folded MLP for one batch tile.

    refs = (x(tile,2D), w0(2D,H0p), b0(1,H0p),
            [w_i(Hp,Hp), b_i(1,Hp)] * (n_hidden-1),
            w_last(8,Hp), b_last(1,1), o_ref(8,tile))
    """
    x_ref = refs[0]
    w0_ref, b0_ref = refs[1], refs[2]
    mid = refs[3:3 + 2 * (n_hidden - 1)]
    wl_ref = refs[3 + 2 * (n_hidden - 1)]
    bl_ref = refs[4 + 2 * (n_hidden - 1)]
    o_ref = refs[-1]

    # Layer 0: single K=2D contraction (concat already folded into the weight).
    x = x_ref[...].astype(mm_dtype)
    h = jnp.dot(x, w0_ref[...].astype(mm_dtype),
                preferred_element_type=jnp.float32) + b0_ref[...]
    h = jnp.maximum(h, 0.0)

    # Remaining hidden layers (128-lane padded; padded lanes stay exactly zero
    # through bias-add + ReLU because the padded weight columns/bias are zero).
    for i in range(n_hidden - 1):
        w = mid[2 * i][...].astype(mm_dtype)
        b = mid[2 * i + 1][...]
        h = jnp.maximum(
            jnp.dot(h.astype(mm_dtype), w, preferred_element_type=jnp.float32) + b,
            0.0)

    # Final hidden -> 1 layer as a lane-dense (8, tile) contraction: the padded
    # weight row lives in sublane 0 of wl, so row 0 of `res` is the result and
    # rows 1..7 are zero.  Store all 8 sublanes (unmasked vst); the wrapper
    # slices row 0.
    res = jax.lax.dot_general(
        wl_ref[...].astype(mm_dtype), h.astype(mm_dtype),
        (((1,), (1,)), ((), ())),
        preferred_element_type=jnp.float32)                 # (8, tile)
    o_ref[...] = (res + bl_ref[...]).astype(o_ref.dtype)


def _prepare_params(params, state_dim):
    """Fold the concat into layer 0, merge the s/ns halves into one (2D, H0p)
    weight, and zero-pad hidden widths to multiples of 128 lanes.

    Returns (flat_param_list, matmul_flops_per_batch_row, max_padded_width).
    """
    w0, b0 = params[0]
    w0 = jnp.asarray(w0, jnp.float32)
    b0 = jnp.asarray(b0, jnp.float32)
    assert w0.shape[0] == 3 * state_dim, "first layer must take 3*state_dim features"
    h0 = w0.shape[1]
    h0p = _round_up(h0, 128)
    d = state_dim

    # [s, ns, ns-s] @ W0  ==  [s | ns] @ [[W0_s - W0_d], [W0_ns + W0_d]]
    w0_merged = jnp.concatenate([w0[:d] - w0[2 * d:], w0[d:2 * d] + w0[2 * d:]],
                                axis=0)                       # (2D, H0)
    flat = [_pad_to(w0_merged, (2 * d, h0p)),
            _pad_to(b0.reshape(1, -1), (1, h0p))]
    flops_per_row = 2 * (2 * d) * h0p
    max_hp = h0p

    prev, prev_p = h0, h0p
    for w, b in params[1:-1]:
        w = jnp.asarray(w, jnp.float32)
        b = jnp.asarray(b, jnp.float32)
        hi = w.shape[1]
        hip = _round_up(hi, 128)
        flat += [_pad_to(w, (prev_p, hip)), _pad_to(b.reshape(1, -1), (1, hip))]
        flops_per_row += 2 * prev_p * hip
        max_hp = max(max_hp, hip)
        prev, prev_p = hi, hip

    w_last, b_last = params[-1]
    w_last = jnp.asarray(w_last, jnp.float32)
    b_last = jnp.asarray(b_last, jnp.float32)
    assert w_last.shape[1] == 1, "reward head must be scalar"
    # Sublane-pad the final weight column to 8 rows (row 0 live) so the last
    # layer is a clean (8, Hp) x (tile, Hp)^T contraction with no reshape.
    wl = jnp.zeros((8, prev_p), jnp.float32).at[0, :prev].set(w_last[:, 0])
    bl = b_last.reshape(1, 1)
    flat += [wl, bl]
    flops_per_row += 2 * 8 * prev_p
    return flat, flops_per_row, max_hp


def _pick_tile(B, tile_b):
    """Batch tile: big (amortize ~0.35us/grid-step), lane-legal, and for large
    batches capped so the grid has >= 2 parallel steps (v7x megacore)."""
    bp8 = _round_up(B, 8)
    if bp8 < 256:
        # Single full-batch tile; the output block's lane extent then equals
        # the full (padded) array extent, which satisfies the (., 128) rule.
        return bp8
    tile = min(tile_b, bp8 // 2)          # at least 2 grid steps
    tile = max(128, (tile // 128) * 128)  # round DOWN to a multiple of 128
    return tile


def reward_forward(states, next_states, params, *, tile_b=2048,
                   matmul_dtype=jnp.float32):
    """states, next_states: (B, state_dim) f32; params: [(W(in,out), b(1,out))...].
    Returns (B, 1) f32."""
    B, D = states.shape
    assert next_states.shape == (B, D)
    assert len(params) >= 2, "expect at least one hidden layer"
    n_hidden = len(params) - 1  # number of ReLU'd linears
    twoD = 2 * D

    flat_params, flops_per_row, max_hp = _prepare_params(params, D)

    # Single streamed input: [s | ns].  The "ns - s" third of the torch concat
    # is folded into the layer-0 weights (exact up to FP reassociation).
    x = jnp.concatenate([states.astype(jnp.float32),
                         next_states.astype(jnp.float32)], axis=-1)

    tile = _pick_tile(B, tile_b)
    Bp = _round_up(B, tile)
    if Bp != B:
        x = jnp.pad(x, ((0, Bp - B), (0, 0)))

    in_specs = [pl.BlockSpec((tile, twoD), lambda i: (i, 0))]
    # Weights/biases: whole-array blocks with a constant index -> fetched once
    # and resident in VMEM (tiny; default double-buffering is negligible here).
    for p in flat_params:
        in_specs.append(pl.BlockSpec(p.shape, lambda i: (0, 0)))

    # Lane-dense output: one full (8, tile) block per grid step into an
    # (8, Bp) slab; row 0 is the reward, rows 1..7 are bias-only filler.
    out_spec = pl.BlockSpec((8, tile), lambda i: (0, i))

    weight_bytes = 4 * sum(int(p.size) for p in flat_params)
    # VMEM budget: streamed input + output blocks double-buffered, weights
    # double-buffered, plus headroom for live (tile, max_hp) f32 activations.
    est_vmem = (2 * tile * twoD * 4 + 2 * 8 * tile * 4
                + 4 * tile * max_hp * 4 + 2 * weight_bytes)
    vmem_limit = int(min(max(2 * est_vmem, 32 * 1024 * 1024), 60 * 1024 * 1024))

    cost = pl.CostEstimate(
        flops=int(Bp) * int(flops_per_row),
        transcendentals=0,
        bytes_accessed=int(Bp * twoD * 4 + Bp * 8 * 4 + weight_bytes))

    kernel = functools.partial(_reward_kernel, n_hidden, matmul_dtype)

    out_slab = pl.pallas_call(
        kernel,
        out_shape=jax.ShapeDtypeStruct((8, Bp), jnp.float32),
        grid_spec=pltpu.PrefetchScalarGridSpec(
            num_scalar_prefetch=0,
            grid=(Bp // tile,),
            in_specs=in_specs,
            out_specs=out_spec,
        ),
        compiler_params=pltpu.CompilerParams(
            # Batch axis shards across TensorCores (>= 2 tiles for large B).
            dimension_semantics=("parallel",),
            vmem_limit_bytes=vmem_limit,
        ),
        cost_estimate=cost,
    )(x, *flat_params)

    return out_slab[0, :B][:, None]


def init_reward_params(key, state_dim, hidden):
    """Deterministic init matching create_mlp sizes = (state_dim*3, *hidden, 1).
    Weights stored as (in, out) so x @ W + b == torch's x @ W_t.T + b."""
    sizes = (state_dim * 3, *hidden, 1)
    params = []
    for i in range(len(sizes) - 1):
        fan_in, fan_out = sizes[i], sizes[i + 1]
        key, kw, kb = jax.random.split(key, 3)
        bound = 1.0 / jnp.sqrt(fan_in)
        w = jax.random.uniform(kw, (fan_in, fan_out), jnp.float32, -bound, bound)
        b = jax.random.uniform(kb, (1, fan_out), jnp.float32, -bound, bound)
        params.append((w, b))
    return params


def reward_reference(states, next_states, params):
    x = jnp.concatenate([states, next_states, next_states - states], axis=-1)
    n = len(params)
    for i, (w, b) in enumerate(params):
        x = x @ w + b
        if i < n - 1:
            x = jnp.maximum(x, 0.0)
    return x


if __name__ == "__main__":
    STATE_DIM = 32
    HIDDEN = (64, 64)

    key = jax.random.PRNGKey(0)
    k_s, k_ns, k_p, k_s2, k_ns2 = jax.random.split(key, 5)
    params = init_reward_params(k_p, STATE_DIM, HIDDEN)

    # Small batch (single-tile path).
    B = 16
    states = jax.random.normal(k_s, (B, STATE_DIM), jnp.float32)
    next_states = jax.random.normal(k_ns, (B, STATE_DIM), jnp.float32)
    out = jax.block_until_ready(reward_forward(states, next_states, params))
    ref = reward_reference(states, next_states, params)
    assert out.shape == (B, 1), out.shape
    assert jnp.allclose(out, ref, atol=1e-4, rtol=1e-4), (
        f"max abs err {jnp.max(jnp.abs(out - ref))}")

    # Medium batch (multi-tile, parallel-grid path).
    B2 = 384
    states2 = jax.random.normal(k_s2, (B2, STATE_DIM), jnp.float32)
    next_states2 = jax.random.normal(k_ns2, (B2, STATE_DIM), jnp.float32)
    out2 = jax.block_until_ready(reward_forward(states2, next_states2, params))
    ref2 = reward_reference(states2, next_states2, params)
    assert out2.shape == (B2, 1), out2.shape
    assert jnp.allclose(out2, ref2, atol=1e-4, rtol=1e-4), (
        f"max abs err {jnp.max(jnp.abs(out2 - ref2))}")

    print("KERNEL_OK")
</pallas_src>

<mosaic_0001>
module attributes {stable_mosaic.version = 11 : i64} {
  func.func @_reward_kernel(%arg0: i32, %arg1: memref<16x64xf32, #tpu.memory_space<vmem>>, %arg2: memref<64x128xf32, #tpu.memory_space<vmem>>, %arg3: memref<1x128xf32, #tpu.memory_space<vmem>>, %arg4: memref<128x128xf32, #tpu.memory_space<vmem>>, %arg5: memref<1x128xf32, #tpu.memory_space<vmem>>, %arg6: memref<8x128xf32, #tpu.memory_space<vmem>>, %arg7: memref<1x1xf32, #tpu.memory_space<vmem>>, %arg8: memref<8x16xf32, #tpu.memory_space<vmem>>) attributes {dimension_semantics = [#tpu.dimension_semantics<parallel>], iteration_bounds = array<i64: 1>, scalar_prefetch = 0 : i64, scratch_operands = 0 : i64, tpu.core_type = #tpu.core_type<tc>, window_params = [{transform_indices = @transform_0, window_bounds = array<i64: 16, 64>}, {pipeline_mode = #tpu.pipeline_mode<synchronous>, transform_indices = @transform_1, window_bounds = array<i64: 64, 128>}, {pipeline_mode = #tpu.pipeline_mode<synchronous>, transform_indices = @transform_2, window_bounds = array<i64: 1, 128>}, {pipeline_mode = #tpu.pipeline_mode<synchronous>, transform_indices = @transform_3, window_bounds = array<i64: 128, 128>}, {pipeline_mode = #tpu.pipeline_mode<synchronous>, transform_indices = @transform_4, window_bounds = array<i64: 1, 128>}, {pipeline_mode = #tpu.pipeline_mode<synchronous>, transform_indices = @transform_5, window_bounds = array<i64: 8, 128>}, {pipeline_mode = #tpu.pipeline_mode<synchronous>, transform_indices = @transform_6, window_bounds = array<i64: 1, 1>}, {transform_indices = @transform_7, window_bounds = array<i64: 8, 16>}]} {
    %c0 = arith.constant 0 : index
    %c0_0 = arith.constant 0 : index
    %0 = vector.load %arg1[%c0, %c0_0] : memref<16x64xf32, #tpu.memory_space<vmem>>, vector<16x64xf32>
    %c0_1 = arith.constant 0 : index
    %c0_2 = arith.constant 0 : index
    %1 = vector.load %arg2[%c0_1, %c0_2] : memref<64x128xf32, #tpu.memory_space<vmem>>, vector<64x128xf32>
    %cst = arith.constant dense<0.000000e+00> : vector<16x128xf32>
    %2 = tpu.matmul %0, %1, %cst {dimension_numbers = #tpu.dot_dimension_numbers<[1], [0], [0], [1], [0, 0, 1, 1], [], []>} : vector<16x64xf32>, vector<64x128xf32>, vector<16x128xf32> -> vector<16x128xf32>
    %c0_3 = arith.constant 0 : index
    %c0_4 = arith.constant 0 : index
    %3 = vector.load %arg3[%c0_3, %c0_4] : memref<1x128xf32, #tpu.memory_space<vmem>>, vector<1x128xf32>
    %4 = vector.broadcast %3 : vector<1x128xf32> to vector<16x128xf32>
    %5 = arith.addf %2, %4 : vector<16x128xf32>
    %cst_5 = arith.constant 0.000000e+00 : f32
    %6 = vector.broadcast %cst_5 : f32 to vector<16x128xf32>
    %7 = arith.maximumf %5, %6 : vector<16x128xf32>
    %c0_6 = arith.constant 0 : index
    %c0_7 = arith.constant 0 : index
    %8 = vector.load %arg4[%c0_6, %c0_7] : memref<128x128xf32, #tpu.memory_space<vmem>>, vector<128x128xf32>
    %c0_8 = arith.constant 0 : index
    %c0_9 = arith.constant 0 : index
    %9 = vector.load %arg5[%c0_8, %c0_9] : memref<1x128xf32, #tpu.memory_space<vmem>>, vector<1x128xf32>
    %cst_10 = arith.constant dense<0.000000e+00> : vector<16x128xf32>
    %10 = tpu.matmul %7, %8, %cst_10 {dimension_numbers = #tpu.dot_dimension_numbers<[1], [0], [0], [1], [0, 0, 1, 1], [], []>} : vector<16x128xf32>, vector<128x128xf32>, vector<16x128xf32> -> vector<16x128xf32>
    %11 = vector.broadcast %9 : vector<1x128xf32> to vector<16x128xf32>
    %12 = arith.addf %10, %11 : vector<16x128xf32>
    %cst_11 = arith.constant 0.000000e+00 : f32
    %13 = vector.broadcast %cst_11 : f32 to vector<16x128xf32>
    %14 = arith.maximumf %12, %13 : vector<16x128xf32>
    %c0_12 = arith.constant 0 : index
    %c0_13 = arith.constant 0 : index
    %15 = vector.load %arg6[%c0_12, %c0_13] : memref<8x128xf32, #tpu.memory_space<vmem>>, vector<8x128xf32>
    %cst_14 = arith.constant dense<0.000000e+00> : vector<8x16xf32>
    %16 = tpu.matmul %15, %14, %cst_14 {dimension_numbers = #tpu.dot_dimension_numbers<[1], [1], [0], [0], [0, 0, 1, 0], [], []>} : vector<8x128xf32>, vector<16x128xf32>, vector<8x16xf32> -> vector<8x16xf32>
    %c0_15 = arith.constant 0 : index
    %c0_16 = arith.constant 0 : index
    %17 = vector.load %arg7[%c0_15, %c0_16] : memref<1x1xf32, #tpu.memory_space<vmem>>, vector<1x1xf32>
    %18 = vector.broadcast %17 : vector<1x1xf32> to vector<8x16xf32>
    %19 = arith.addf %16, %18 : vector<8x16xf32>
    %c0_17 = arith.constant 0 : index
    %c0_18 = arith.constant 0 : index
    %20 = vector.load %arg8[%c0_17, %c0_18] : memref<8x16xf32, #tpu.memory_space<vmem>>, vector<8x16xf32>
    tpu.vector_store %arg8[%c0_17, %c0_18], %19 {strides = array<i32>} : memref<8x16xf32, #tpu.memory_space<vmem>>, vector<8x16xf32>,
    return
  }
  func.func @transform_0(%arg0: i32) -> (i32, i32) {
    %c0_i32 = arith.constant 0 : i32
    %c0_i32_0 = arith.constant 0 : i32
    return %arg0, %c0_i32 : i32, i32
  }
  func.func @transform_1(%arg0: i32) -> (i32, i32) {
    %c0_i32 = arith.constant 0 : i32
    %c0_i32_0 = arith.constant 0 : i32
    %c0_i32_1 = arith.constant 0 : i32
    return %c0_i32, %c0_i32_0 : i32, i32
  }
  func.func @transform_2(%arg0: i32) -> (i32, i32) {
    %c0_i32 = arith.constant 0 : i32
    %c0_i32_0 = arith.constant 0 : i32
    %c0_i32_1 = arith.constant 0 : i32
    return %c0_i32, %c0_i32_0 : i32, i32
  }
  func.func @transform_3(%arg0: i32) -> (i32, i32) {
    %c0_i32 = arith.constant 0 : i32
    %c0_i32_0 = arith.constant 0 : i32
    %c0_i32_1 = arith.constant 0 : i32
    return %c0_i32, %c0_i32_0 : i32, i32
  }
  func.func @transform_4(%arg0: i32) -> (i32, i32) {
    %c0_i32 = arith.constant 0 : i32
    %c0_i32_0 = arith.constant 0 : i32
    %c0_i32_1 = arith.constant 0 : i32
    return %c0_i32, %c0_i32_0 : i32, i32
  }
  func.func @transform_5(%arg0: i32) -> (i32, i32) {
    %c0_i32 = arith.constant 0 : i32
    %c0_i32_0 = arith.constant 0 : i32
    %c0_i32_1 = arith.constant 0 : i32
    return %c0_i32, %c0_i32_0 : i32, i32
  }
  func.func @transform_6(%arg0: i32) -> (i32, i32) {
    %c0_i32 = arith.constant 0 : i32
    %c0_i32_0 = arith.constant 0 : i32
    %c0_i32_1 = arith.constant 0 : i32
    return %c0_i32, %c0_i32_0 : i32, i32
  }
  func.func @transform_7(%arg0: i32) -> (i32, i32) {
    %c0_i32 = arith.constant 0 : i32
    %c0_i32_0 = arith.constant 0 : i32
    return %c0_i32, %arg0 : i32, i32
  }
}

</mosaic_0001>

<bundles_post_ra>
// kernel: tpu_custom_call.1
= control target key start
LH: loop header
LB: loop body
LE: loop exit
PB: predicated region body
PF: predicated region fallthrough
CT: control target
= control target key end

     0   :  { %s751_s0 = inlined_call_operand.hbm [shape: f32[16,64], index: 0, kind: input, shape index: {}]   ;;  %s752_s1 = inlined_call_operand.hbm [shape: f32[64,128], index: 1, kind: input, shape index: {}]   ;;  %s753_s2 = inlined_call_operand.vmem [shape: f32[1,128], index: 2, kind: input, shape index: {}]   ;;  %s754_s3 = inlined_call_operand.hbm [shape: f32[128,128], index: 3, kind: input, shape index: {}]   ;;  %s755_s4 = inlined_call_operand.vmem [shape: f32[1,128], index: 4, kind: input, shape index: {}]   ;;  %s756_s5 = inlined_call_operand.vmem [shape: f32[8,128], index: 5, kind: input, shape index: {}]   ;;  %s757_s6 = inlined_call_operand.<no memory space> [shape: f32[1,1], index: 6, kind: input, shape index: {}]   ;;  %s758_s7 = inlined_call_operand.hbm [shape: f32[8,16], index: 7, kind: output, shape index: {}]  }
   0x1   :  { %v12_v0 = vstv %s757_s6 }
   0x2   :  { %13 = vst [vmem:[#allocation2] sm:$0x1] %v12_v0 }
   0x3   :  { %14 = vsyncpa [#allocation4], 0 }
   0x4   :  { %15 = vsyncpa [#allocation7], 0 }
   0x5   :  { %16 = vsyncpa [#allocation5], 0  ;;  %s623_s26 = smov [#allocation6]   ;;  %s624_s28 = smov [#allocation3]  }
   0x6   :  { %s34_s27 = sshll.u32 %s623_s26, 4  ;;  %s22_s29 = sshll.u32 %s624_s28, 4  ;;  %s35_s27 = int_to_ptr.vmem [resolvable:$true] %s34_s27  ;;  %s676_s29 = int_to_ptr.vmem [resolvable:$true] %s22_s29 }
   0x7   :  { %s529_s9 = scalar_lea.hbm %s752_s1, 1024 }
   0x8   :  { %p530_p0 = scmp.ne.s32.totalorder %s752_s1, %s529_s9  ;;  %p533_p1 = scmp.lt.u32.totalorder %s529_s9, %s752_s1 }
   0xa   :  { %p535_p2 = pnand %p533_p1, %p530_p0 }
   0xc   :  { %538 = shalt.err (!%p535_p2)
}
   0xd   :  { %s539_s13 = scalar_lea.vmem %s35_s27, 1024  ;;  %p544_p4 = scmp.lt.s32.totalorder %s35_s27, %s35_s27 }
   0xe   :  { %p540_p3 = scmp.ne.s32.totalorder %s35_s27, %s539_s13  ;;  %p545_p5 = scmp.lt.s32.totalorder %s539_s13, %s539_s13 }
  0x10   :  { %p546_p6 = por %p545_p5, %p544_p4 }
  0x12   :  { %p547_p7 = pnand %p546_p6, %p540_p3 }
  0x14   :  { %550 = shalt.err (!%p547_p7)
}
  0x15   :  { %s625_s14 = smov 128   ;;  %s626_s15 = smov 8  }
  0x16   :  { %40 = dma.hbm_to_vmem [thread:$0]  %s752_s1, 1024, %s35_s27, [#allocation7], %s625_s14, %s625_s14, %s626_s15  }
  0x17   :  { %s551_s20 = scalar_lea.hbm %s751_s0, 256 }
  0x18   :  { %p552_p8 = scmp.ne.s32.totalorder %s751_s0, %s551_s20  ;;  %p555_p9 = scmp.lt.u32.totalorder %s551_s20, %s751_s0 }
  0x1a   :  { %p557_p10 = pnand %p555_p9, %p552_p8 }
  0x1c   :  { %560 = shalt.err (!%p557_p10)
}
  0x1d   :  { %s561_s25 = scalar_lea.vmem %s676_s29, 256  ;;  %p566_p12 = scmp.lt.s32.totalorder %s676_s29, %s676_s29 }
  0x1e   :  { %p562_p11 = scmp.ne.s32.totalorder %s676_s29, %s561_s25  ;;  %p567_p13 = scmp.lt.s32.totalorder %s561_s25, %s561_s25 }
  0x20   :  { %p568_p0 = por %p567_p13, %p566_p12 }
  0x22   :  { %p569_p1 = pnand %p568_p0, %p562_p11 }
  0x24   :  { %572 = shalt.err (!%p569_p1)
}
  0x25   :  { %28 = dma.hbm_to_vmem [thread:$0]  %s751_s0, 256, %s676_s29, [#allocation4], %s625_s14, %s625_s14, %s626_s15  }
  0x26   :  { %s627_s27 = smov [#allocation8]   ;;  %s573_s9 = scalar_lea.hbm %s754_s3, 2048 }
  0x27   :  { %s48_s28 = sshll.u32 %s627_s27, 4  ;;  %p574_p2 = scmp.ne.s32.totalorder %s754_s3, %s573_s9  ;;  %s49_s28 = int_to_ptr.vmem [resolvable:$true] %s48_s28 }
  0x28   :  { %p577_p3 = scmp.lt.u32.totalorder %s573_s9, %s754_s3 }
  0x2a   :  { %p579_p4 = pnand %p577_p3, %p574_p2 }
  0x2c   :  { %582 = shalt.err (!%p579_p4)
}
  0x2d   :  { %s583_s13 = scalar_lea.vmem %s49_s28, 2048  ;;  %p588_p6 = scmp.lt.s32.totalorder %s49_s28, %s49_s28 }
  0x2e   :  { %p584_p5 = scmp.ne.s32.totalorder %s49_s28, %s583_s13  ;;  %p589_p7 = scmp.lt.s32.totalorder %s583_s13, %s583_s13 }
  0x30   :  { %p590_p8 = por %p589_p7, %p588_p6 }
  0x32   :  { %p591_p9 = pnand %p590_p8, %p584_p5 }
  0x34   :  { %594 = shalt.err (!%p591_p9)
}
  0x35   :  { %54 = dma.hbm_to_vmem [thread:$0]  %s754_s3, 2048, %s49_s28, [#allocation7], %s625_s14, %s625_s14, %s626_s15  }
  0x36   :  { %617 = dma.done.wait [#allocation4], 256  }
  0x37   :  { %618 = vsyncadd [#allocation4], 4294967040 }
  0x38   :  { %619 = dma.done.wait [#allocation7], 3072  }
  0x39   :  { %620 = vsyncadd [#allocation7], 4294964224  ;;  %v72_v1 = vld [vmem:[#allocation6] sm:$0xff]  ;;  %v73_v2 = vld [vmem:[#allocation6 + $0x8] sm:$0xff]  ;;  %vm87_vm0 = vcmask 523264   ;;  %v628_v46 = vmov 0.0|0.0  }
  0x3a   :  { %v74_v3 = vld [vmem:[#allocation6 + $0x10] sm:$0xff]  ;;  %v467_v4 = vpack.c.bf16 %v73_v2, %v72_v1  ;;  %v75_v5 = vld [vmem:[#allocation6 + $0x18] sm:$0xff]  ;;  %v76_v7 = vld [vmem:[#allocation6 + $0x20] sm:$0xff]  ;;  %vm629_vm1 = vmmov 0   ;;  %v630_v47 = vmov 0.0   ;;  %v631_v49 = vmov 0  }
  0x3b   :  { %v471_v6 = vpack.c.bf16 %v75_v5, %v74_v3  ;;  %v77_v8 = vld [vmem:[#allocation6 + $0x28] sm:$0xff]  ;;  %v70_v9 = vld [vmem:[#allocation3] sm:$0xff]  ;;  %v171_v10 = vld [vmem:[#allocation8] sm:$0xff]  ;;  %528 = vset.pattern.permute.xlu0 %v631_v49  ;;  %s632_s18 = smov [#allocation9]   ;;  %vm352_vm2 = vcmask 130048  }
  0x3c   :  { %468 = vmatprep.subr.bf16.mxu0 %v467_v4  ;;  %422 = vmatprep.mubr.msk.f32.mxu0 %vm87_vm0, %v70_v9  ;;  %v172_v11 = vld [vmem:[#allocation8 + $0x8] sm:$0xff]  ;;  %v173_v13 = vld [vmem:[#allocation8 + $0x10] sm:$0xff]  ;;  %v174_v14 = vld [vmem:[#allocation8 + $0x18] sm:$0xff]  ;;  %v475_v15 = vpack.c.bf16 %v77_v8, %v76_v7  ;;  %s360_s19 = sshll.u32 %s632_s18, 4  ;;  %s361_s19 = int_to_ptr.vmem [resolvable:$true] %s360_s19 }
  0x3d   :  { %470 = vmatpush3.bf16.msra.mxu0 %v467_v4  ;;  %v483_v12 = vpack.c.bf16 %v172_v11, %v171_v10  ;;  %v487_v16 = vpack.c.bf16 %v174_v14, %v173_v13  ;;  %v175_v17 = vld [vmem:[#allocation8 + $0x20] sm:$0xff]  ;;  %v176_v18 = vld [vmem:[#allocation8 + $0x28] sm:$0xff]  ;;  %v78_v19 = vld [vmem:[#allocation6 + $0x30] sm:$0xff]  ;;  %p600_p11 = scmp.lt.s32.totalorder %s361_s19, %s361_s19 }
  0x3e   :  { %472 = vmatprep.subr.bf16.mxu0 %v471_v6  ;;  %v79_v20 = vld [vmem:[#allocation6 + $0x38] sm:$0xff]  ;;  %v491_v21 = vpack.c.bf16 %v176_v18, %v175_v17  ;;  %v177_v23 = vld [vmem:[#allocation8 + $0x30] sm:$0xff]  ;;  %v179_v26 = vld [vmem:[#allocation8 + $0x40] sm:$0xff] }
  0x3f   :  { %484 = vmatprep.subr.bf16.mxu1 %v483_v12  ;;  %v479_v22 = vpack.c.bf16 %v79_v20, %v78_v19  ;;  %v178_v24 = vld [vmem:[#allocation8 + $0x38] sm:$0xff]  ;;  %v180_v27 = vld [vmem:[#allocation8 + $0x48] sm:$0xff]  ;;  %v181_v30 = vld [vmem:[#allocation8 + $0x50] sm:$0xff] }
  0x40   :  { %486 = vmatpush3.bf16.msra.mxu1 %v483_v12  ;;  %v495_v25 = vpack.c.bf16 %v178_v24, %v177_v23  ;;  %v71_v28 = vld [vmem:[#allocation3 + $0x8] sm:$0xff]  ;;  %v499_v29 = vpack.c.bf16 %v180_v27, %v179_v26  ;;  %v183_v33 = vld [vmem:[#allocation8 + $0x60] sm:$0xff]  ;;  %v184_v34 = vld [vmem:[#allocation8 + $0x68] sm:$0xff] }
  0x41   :  { %474 = vmatpush3.bf16.msra.mxu0 %v471_v6  ;;  %488 = vmatprep.subr.bf16.mxu1 %v487_v16  ;;  %v182_v31 = vld [vmem:[#allocation8 + $0x58] sm:$0xff]  ;;  %v507_v35 = vpack.c.bf16 %v184_v34, %v183_v33  ;;  %v185_v36 = vld [vmem:[#allocation8 + $0x70] sm:$0xff]  ;;  %v370_v39 = vld [vmem:[%s753_s2] ss:$0 sm:$0xff] }
  0x42   :  { %476 = vmatprep.subr.bf16.mxu0 %v475_v15  ;;  %v503_v32 = vpack.c.bf16 %v182_v31, %v181_v30  ;;  %v186_v37 = vld [vmem:[#allocation8 + $0x78] sm:$0xff]  ;;  %v374_v48 = vld [vmem:[#allocation2] ss:$0 sm:$0xff] }
  0x43   :  { %v511_v38 = vpack.c.bf16 %v186_v37, %v185_v36  ;;  %279 = vperm.xlu0 %528, %v374_v48   ;;  %v373_v50 = vld [vmem:[%s755_s4] ss:$0 sm:$0xff]  ;;  %s595_s4 = scalar_lea.vmem %s361_s19, 128 }
  0x44   :  { %490 = vmatpush3.bf16.msra.mxu1 %v487_v16  ;;  %v271_v58 = vld [vmem:[%s756_s5] sm:$0xff]  ;;  %p596_p10 = scmp.ne.s32.totalorder %s361_s19, %s595_s4  ;;  %p601_p12 = scmp.lt.s32.totalorder %s595_s4, %s595_s4 }
  0x45   :  { %478 = vmatpush3.bf16.msra.mxu0 %v475_v15  ;;  %492 = vmatprep.subr.bf16.mxu1 %v491_v21 }
  0x46   :  { %480 = vmatprep.subr.bf16.mxu0 %v479_v22  ;;  %p602_p13 = por %p601_p12, %p600_p11 }
  0x48   :  { %494 = vmatpush3.bf16.msra.mxu1 %v491_v21  ;;  %p603_p0 = pnand %p602_p13, %p596_p10 }
  0x49   :  { %482 = vmatpush3.bf16.msra.mxu0 %v479_v22  ;;  %496 = vmatprep.subr.bf16.mxu1 %v495_v25 }
  0x4a   :  { %515 = vmatprep.subr.bf16.mxu0 %v628_v46 }
  0x4c   :  { %423 = vmatmul.mubr.msk.f32.vlgmr.msra.gmra.mrb[0].mxu0 %vm87_vm0, %v71_v28  ;;  %498 = vmatpush3.bf16.msra.mxu1 %v495_v25 }
  0x4d   :  { %500 = vmatprep.subr.bf16.mxu1 %v499_v29  ;;  %464 = vmatprep.mubr.msk.f32.mxu0 %vm629_vm1, %v630_v47 }
  0x50   :  { %502 = vmatpush3.bf16.msra.mxu1 %v499_v29 }
  0x51   :  { %504 = vmatprep.subr.bf16.mxu1 %v503_v32 }
  0x54   :  { %506 = vmatpush3.bf16.msra.mxu1 %v503_v32 }
  0x55   :  { %508 = vmatprep.subr.bf16.mxu1 %v507_v35 }
  0x58   :  { %510 = vmatpush3.bf16.msra.mxu1 %v507_v35 }
  0x59   :  { %512 = vmatprep.subr.bf16.mxu1 %v511_v38 }
  0x5c   :  { %514 = vmatpush3.bf16.msra.mxu1 %v511_v38 }
  0xc2   :  { %v280_v59 = vpop.permute.xlu0 %279 }
 0x11f   :  { %v424_v40 = vpop.f32.mrb[0].mxu0 }
 0x120   :  { %v166_v41 = vadd.f32 %v424_v40, %v370_v39  ;;  %v160_v42 = vpop.f32.mrb[1].mxu0 }
 0x121   :  { %v161_v43 = vadd.f32 %v370_v39, %v160_v42 }
 0x122   :  { %v170_v45 = vmax.f32 %v166_v41, 0.0 }
 0x123   :  { %v169_v44 = vmax.f32 %v161_v43, 0.0 }
 0x125   :  { %457 = vmatprep.mubr.f32.mxu1 %v169_v44 }
 0x126   :  { %458 = vmatmul.mubr.f32.vlgmr.msra.gmra.mrb[0].mxu1 %v170_v45 }
 0x1f9   :  { %v459_v51 = vpop.f32.mrb[0].mxu1 }
 0x1fa   :  { %v266_v52 = vadd.f32 %v459_v51, %v373_v50  ;;  %v260_v53 = vpop.f32.mrb[1].mxu1 }
 0x1fb   :  { %v261_v54 = vadd.f32 %v373_v50, %v260_v53 }
 0x1fc   :  { %v270_v55 = vmax.f32 %v266_v52, 0.0 }
 0x1fd   :  { %v269_v56 = vmax.f32 %v261_v54, 0.0 }
 0x1ff   :  { %v516_v57 = vpack.c.bf16 %v270_v55, %v269_v56 }
 0x201   :  { %517 = vmatpush3.bf16.xpose.msra.mxu0 %v516_v57 }
 0x208   :  { %465 = vmatmul.mubr.f32.vlgmr.msra.gmra.mrb[2].mxu0 %v271_v58 }
 0x2db   :  { %v348_v60 = vpop.f32.mrb[2].mxu0 }
 0x2dc   :  { %v349_v61 = vadd.f32 %v348_v60, %v280_v59  ;;  %v466_v62 = vpop.f32.mrb[3].mxu0 }
 0x2de   :  { %353 = vst.msk [vmem:[#allocation9] sm:$0xff] %vm352_vm2, %v349_v61 }
 0x2df   :  { %606 = shalt.err (!%p603_p0)
}
 0x2e0   :  { %s607_s5 = scalar_lea.hbm %s758_s7, 128 }
 0x2e1   :  { %p608_p1 = scmp.ne.s32.totalorder %s758_s7, %s607_s5  ;;  %p611_p2 = scmp.lt.u32.totalorder %s607_s5, %s758_s7 }
 0x2e3   :  { %p613_p3 = pnand %p611_p2, %p608_p1 }
 0x2e5   :  { %616 = shalt.err (!%p613_p3)
}
 0x2e6   :  { %363 = dma.vmem_to_hbm [thread:$0]  %s361_s19, 128, %s758_s7, [#allocation5]  }
 0x2e7   :  { %621 = dma.done.wait [#allocation5], 128  }
 0x2e8   :  { %622 = vsyncadd [#allocation5], 4294967168 }
 0x2e9   :  { %367 = vsyncpa [#allocation4], 1 }
 0x2ea   :  { %368 = vsyncpa [#allocation7], 1 }
 0x2eb   :  { %369 = vsyncpa [#allocation5], 1 }

</bundles_post_ra>
